<compile_context>
chip_gen: v6e
topology: v6e:2x2x1
jax: 0.10.0
libtpu: 0.0.40
codegen_flags: <defaults>
</compile_context>

<pallas_src>
import jax
import jax.numpy as jnp
from jax.experimental import pallas as pl
from jax.experimental.pallas import tpu as pltpu


def _round_up(x, m):
    return (x + m - 1) // m * m


# ---------------------------------------------------------------------------
# Kernel bodies
# ---------------------------------------------------------------------------
def _ffn_resident_kernel(x_ref, w1_ref, b1_ref, w2_ref, b2_ref, o_ref):
    """Whole W1/W2 resident in VMEM: grid = (row tiles,), no reduction axis."""
    x = x_ref[...].astype(w1_ref.dtype)
    h = jnp.dot(x, w1_ref[...], preferred_element_type=jnp.float32)
    h = jnp.maximum(h + b1_ref[...], 0.0)
    y = jnp.dot(h.astype(w2_ref.dtype), w2_ref[...],
                preferred_element_type=jnp.float32)
    o_ref[...] = (y + b2_ref[...]).astype(o_ref.dtype)


def _ffn_reduce_f32out_kernel(x_ref, w1_ref, b1_ref, w2_ref, b2_ref, o_ref):
    """d_ff reduction grid, f32 output: accumulate directly into o_ref."""
    k = pl.program_id(1)
    x = x_ref[...].astype(w1_ref.dtype)
    h = jnp.dot(x, w1_ref[...], preferred_element_type=jnp.float32)
    h = jnp.maximum(h + b1_ref[...], 0.0)
    part = jnp.dot(h.astype(w2_ref.dtype), w2_ref[...],
                   preferred_element_type=jnp.float32)

    @pl.when(k == 0)
    def _():
        o_ref[...] = part + b2_ref[...]

    @pl.when(k > 0)
    def _():
        o_ref[...] += part


def _ffn_reduce_kernel(x_ref, w1_ref, b1_ref, w2_ref, b2_ref, o_ref, acc_ref):
    """d_ff reduction grid, non-f32 output: f32 VMEM scratch accumulator."""
    k = pl.program_id(1)
    x = x_ref[...].astype(w1_ref.dtype)
    h = jnp.dot(x, w1_ref[...], preferred_element_type=jnp.float32)
    h = jnp.maximum(h + b1_ref[...], 0.0)
    part = jnp.dot(h.astype(w2_ref.dtype), w2_ref[...],
                   preferred_element_type=jnp.float32)

    @pl.when(k == 0)
    def _():
        acc_ref[...] = part          # write first partial; no zero-fill + add

    @pl.when(k > 0)
    def _():
        acc_ref[...] += part

    @pl.when(k == pl.num_programs(1) - 1)
    def _():
        o_ref[...] = (acc_ref[...] + b2_ref[...]).astype(o_ref.dtype)


# ---------------------------------------------------------------------------
# Wrapper
# ---------------------------------------------------------------------------
def feed_forward_sublayer(x, w1, b1, w2, b2, *, tm=512, tff=512,
                          compute_dtype=jnp.bfloat16,
                          vmem_budget_bytes=None,
                          weights_resident=None):
    """relu(x @ w1 + b1) @ w2 + b2 with f32 MXU accumulation.

    x: (..., d_mod); w1: (d_mod, d_ff); b1: (d_ff,); w2: (d_ff, d_mod); b2: (d_mod,).
    """
    orig_shape = x.shape
    out_dtype = x.dtype
    d_mod = orig_shape[-1]
    d_ff = w1.shape[1]
    assert w1.shape == (d_mod, d_ff) and w2.shape == (d_ff, d_mod)
    assert b1.shape == (d_ff,) and b2.shape == (d_mod,)

    compute_dtype = jnp.dtype(compute_dtype)
    c_itemsize = compute_dtype.itemsize
    x_itemsize = jnp.dtype(x.dtype).itemsize
    out_itemsize = jnp.dtype(out_dtype).itemsize
    out_is_f32 = jnp.dtype(out_dtype) == jnp.dtype(jnp.float32)

    x2d = x.reshape(-1, d_mod)
    M = x2d.shape[0]

    # --- lane-dense padding of the feature axes (multiples of 128) ------------
    d_pad = _round_up(d_mod, 128)
    d_ff_pad = _round_up(d_ff, 128)

    # --- per-generation VMEM budget --------------------------------------------
    if vmem_budget_bytes is None:
        try:
            phys = int(pltpu.get_tpu_info().vmem_capacity_bytes)
        except Exception:
            phys = 64 * 1024 * 1024           # conservative (v7x per-core) fallback
        phys = max(phys, 32 * 1024 * 1024)
        vmem_budget_bytes = phys * 3 // 4     # ~96 MiB v5e/v6e, ~48 MiB v7x
    vmem_budget_bytes = int(vmem_budget_bytes)

    # --- pad & cast weights / biases (one-time, amortized over row tiles) -----
    if d_pad != d_mod or d_ff_pad != d_ff:
        w1p = jnp.pad(w1, ((0, d_pad - d_mod), (0, d_ff_pad - d_ff)))
        w2p = jnp.pad(w2, ((0, d_ff_pad - d_ff), (0, d_pad - d_mod)))
    else:
        w1p, w2p = w1, w2
    w1p = w1p.astype(compute_dtype)
    w2p = w2p.astype(compute_dtype)
    b1p = jnp.pad(b1, (0, d_ff_pad - d_ff)).reshape(1, d_ff_pad).astype(jnp.float32)
    b2p = jnp.pad(b2, (0, d_pad - d_mod)).reshape(1, d_pad).astype(jnp.float32)

    # x: pad only the feature axis.  Rows are never padded in the wrapper; the
    # ragged last row tile is handled by Pallas partial blocks (padded output
    # rows are simply not written back), saving a full HBM pass over x.
    xw = x2d if d_pad == d_mod else jnp.pad(x2d, ((0, 0), (0, d_pad - d_mod)))

    # --- resident-weights decision ---------------------------------------------
    weight_bytes = 2 * d_pad * d_ff_pad * c_itemsize            # W1 + W2
    bias_bytes = 8 * (d_ff_pad + d_pad) * 4                     # sublane-padded f32
    resident_bytes = 2 * (weight_bytes + bias_bytes)            # double-buffer bound
    if weights_resident is None:
        weights_resident = resident_bytes <= vmem_budget_bytes // 2

    # --- row tile ----------------------------------------------------------------
    tm_eff = max(8, min(_round_up(M, 8), _round_up(tm, 8)))
    if weights_resident and M >= 16:
        # Keep >= 2 row tiles so both v7x TensorCores get work ("parallel" axis);
        # cost on single-TC chips is one extra ~0.35us grid step.
        tm_eff = min(tm_eff, _round_up(pl.cdiv(M, 2), 8))

    if weights_resident:
        # ----------------------------- fast path --------------------------------
        def footprint(rows):
            return (resident_bytes
                    + 2 * rows * d_pad * (x_itemsize + out_itemsize)  # x & out tiles
                    + rows * d_ff_pad * (4 + c_itemsize)              # hidden h + cast
                    + rows * d_pad * 4)                               # f32 y pre-cast

        while footprint(tm_eff) > vmem_budget_bytes and tm_eff > 8:
            tm_eff = max(8, _round_up(tm_eff // 2, 8))

        grid_m = pl.cdiv(M, tm_eff)
        flops = 4 * grid_m * tm_eff * d_pad * d_ff_pad
        bytes_accessed = (xw.size * x_itemsize + weight_bytes
                          + (b1p.size + b2p.size) * 4 + M * d_pad * out_itemsize)
        vmem_limit = int(max(32 * 1024 * 1024,
                             min(footprint(tm_eff) * 5 // 4,
                                 vmem_budget_bytes * 5 // 4)))

        out2d = pl.pallas_call(
            _ffn_resident_kernel,
            out_shape=jax.ShapeDtypeStruct((M, d_pad), out_dtype),
            grid_spec=pltpu.PrefetchScalarGridSpec(
                num_scalar_prefetch=0,
                grid=(grid_m,),
                in_specs=[
                    pl.BlockSpec((tm_eff, d_pad), lambda i: (i, 0)),     # x rows
                    pl.BlockSpec((d_pad, d_ff_pad), lambda i: (0, 0)),   # W1 (resident)
                    pl.BlockSpec((1, d_ff_pad), lambda i: (0, 0)),       # b1
                    pl.BlockSpec((d_ff_pad, d_pad), lambda i: (0, 0)),   # W2 (resident)
                    pl.BlockSpec((1, d_pad), lambda i: (0, 0)),          # b2
                ],
                out_specs=pl.BlockSpec((tm_eff, d_pad), lambda i: (i, 0)),
            ),
            compiler_params=pltpu.CompilerParams(
                dimension_semantics=("parallel",),
                vmem_limit_bytes=vmem_limit,
            ),
            cost_estimate=pl.CostEstimate(flops=int(flops), transcendentals=0,
                                          bytes_accessed=int(bytes_accessed)),
        )(xw, w1p, b1p, w2p, b2p)

    else:
        # --------------------------- reduction path ------------------------------
        acc_row_bytes = 0 if out_is_f32 else d_pad * 4

        def footprint(rows, tf):
            return (2 * (rows * d_pad * x_itemsize          # x tile (double-buffered)
                         + d_pad * tf * c_itemsize          # W1 slab
                         + tf * d_pad * c_itemsize          # W2 slab
                         + 8 * tf * 4 + 8 * d_pad * 4       # biases (sublane-padded)
                         + rows * d_pad * out_itemsize)     # out tile
                    + rows * acc_row_bytes                  # f32 scratch accumulator
                    + rows * tf * (4 + c_itemsize)          # hidden h + cast copy
                    + rows * d_pad * 4)                     # f32 partial product

        tff0 = max(128, min(_round_up(tff, 128), d_ff_pad))
        tff_cands = [t for t in range(tff0, 0, -128) if d_ff_pad % t == 0]
        tff_floor = min(256, d_ff_pad)
        ti = 0
        while footprint(tm_eff, tff_cands[ti]) > vmem_budget_bytes:
            if ti + 1 < len(tff_cands) and tff_cands[ti + 1] >= tff_floor:
                ti += 1                                      # shrink d_ff tile first
            elif tm_eff > 8:
                tm_eff = max(8, _round_up(tm_eff // 2, 8))   # then halve the row tile
            elif ti + 1 < len(tff_cands):
                ti += 1                                      # last resort: below floor
            else:
                break
        tff_eff = tff_cands[ti]

        grid_m = pl.cdiv(M, tm_eff)
        grid_k = d_ff_pad // tff_eff
        flops = 4 * grid_m * tm_eff * d_pad * d_ff_pad
        bytes_accessed = (xw.size * x_itemsize + grid_m * weight_bytes
                          + (b1p.size + b2p.size) * 4 + M * d_pad * out_itemsize)
        vmem_limit = int(max(32 * 1024 * 1024,
                             min(footprint(tm_eff, tff_eff) * 5 // 4,
                                 vmem_budget_bytes * 5 // 4)))

        kernel = _ffn_reduce_f32out_kernel if out_is_f32 else _ffn_reduce_kernel
        scratch = [] if out_is_f32 else [pltpu.VMEM((tm_eff, d_pad), jnp.float32)]

        out2d = pl.pallas_call(
            kernel,
            out_shape=jax.ShapeDtypeStruct((M, d_pad), out_dtype),
            grid_spec=pltpu.PrefetchScalarGridSpec(
                num_scalar_prefetch=0,
                grid=(grid_m, grid_k),
                in_specs=[
                    pl.BlockSpec((tm_eff, d_pad), lambda i, k: (i, 0)),    # x rows
                    pl.BlockSpec((d_pad, tff_eff), lambda i, k: (0, k)),   # W1 col slab
                    pl.BlockSpec((1, tff_eff), lambda i, k: (0, k)),       # b1 slab
                    pl.BlockSpec((tff_eff, d_pad), lambda i, k: (k, 0)),   # W2 row slab
                    pl.BlockSpec((1, d_pad), lambda i, k: (0, 0)),         # b2
                ],
                out_specs=pl.BlockSpec((tm_eff, d_pad), lambda i, k: (i, 0)),
                scratch_shapes=scratch,
            ),
            compiler_params=pltpu.CompilerParams(
                dimension_semantics=("parallel", "arbitrary"),
                vmem_limit_bytes=vmem_limit,
            ),
            cost_estimate=pl.CostEstimate(flops=int(flops), transcendentals=0,
                                          bytes_accessed=int(bytes_accessed)),
        )(xw, w1p, b1p, w2p, b2p)

    if d_pad != d_mod:
        out2d = out2d[:, :d_mod]
    return out2d.reshape(orig_shape)


def init_params(key, d_mod, d_ff, dtype=jnp.float32):
    """Deterministic init mimicking nn.Linear's uniform(-1/sqrt(fan_in), 1/sqrt(fan_in))."""
    k1, k2, k3, k4 = jax.random.split(key, 4)
    lim1 = 1.0 / (d_mod ** 0.5)
    lim2 = 1.0 / (d_ff ** 0.5)
    # stored as (in, out) so the kernel computes x @ W directly
    w1 = jax.random.uniform(k1, (d_mod, d_ff), dtype, -lim1, lim1)
    b1 = jax.random.uniform(k2, (d_ff,), dtype, -lim1, lim1)
    w2 = jax.random.uniform(k3, (d_ff, d_mod), dtype, -lim2, lim2)
    b2 = jax.random.uniform(k4, (d_mod,), dtype, -lim2, lim2)
    return w1, b1, w2, b2


if __name__ == "__main__":
    key = jax.random.PRNGKey(0)
    kx, kp, kx2 = jax.random.split(key, 3)

    def ref_ffn(x, w1, b1, w2, b2):
        xf = x.astype(jnp.float32)
        return jnp.maximum(xf @ w1 + b1, 0.0) @ w2 + b2

    # Case 1: decoder-spec dims (d_mod=32, d_ff=64) -> resident-weights fast path.
    batch, seq, d_mod, d_ff = 2, 8, 32, 64
    x = jax.random.normal(kx, (batch, seq, d_mod), jnp.float32)
    w1, b1, w2, b2 = init_params(kp, d_mod, d_ff)
    ref = ref_ffn(x, w1, b1, w2, b2)

    out_bf16 = jax.block_until_ready(feed_forward_sublayer(x, w1, b1, w2, b2))
    assert out_bf16.shape == x.shape and out_bf16.dtype == x.dtype
    assert jnp.allclose(out_bf16, ref, atol=5e-2, rtol=5e-2)

    out_f32 = jax.block_until_ready(
        feed_forward_sublayer(x, w1, b1, w2, b2, compute_dtype=jnp.float32))
    assert jnp.allclose(out_f32, ref, atol=1e-4, rtol=1e-4)

    # Case 2: ragged row count (M=15) -> partial last row tile, no wrapper row pad.
    xr = jax.random.normal(kx2, (3, 5, d_mod), jnp.float32)
    out_r = jax.block_until_ready(feed_forward_sublayer(xr, w1, b1, w2, b2))
    assert out_r.shape == xr.shape
    assert jnp.allclose(out_r, ref_ffn(xr, w1, b1, w2, b2), atol=5e-2, rtol=5e-2)

    # Case 3: forced d_ff reduction grid (grid_k=2), f32 output -> accumulate
    # directly into o_ref (no scratch).
    d_mod3, d_ff3 = 128, 256
    k3, k4 = jax.random.split(kp)
    x3 = jax.random.normal(k3, (4, 8, d_mod3), jnp.float32)
    p3 = init_params(k4, d_mod3, d_ff3)
    out3 = jax.block_until_ready(
        feed_forward_sublayer(x3, *p3, tff=128, compute_dtype=jnp.float32,
                              weights_resident=False))
    assert jnp.allclose(out3, ref_ffn(x3, *p3), atol=1e-4, rtol=1e-4)

    # Case 4: forced reduction grid with bf16 in/out -> f32 scratch accumulator path.
    x4 = x3.astype(jnp.bfloat16)
    out4 = jax.block_until_ready(
        feed_forward_sublayer(x4, *p3, tff=128, weights_resident=False))
    assert out4.dtype == jnp.bfloat16
    assert jnp.allclose(out4.astype(jnp.float32), ref_ffn(x4, *p3),
                        atol=5e-2, rtol=5e-2)

    print("KERNEL_OK")
</pallas_src>

<mosaic_0001>
module attributes {stable_mosaic.version = 11 : i64} {
  func.func @_ffn_resident_kernel(%arg0: i32, %arg1: memref<8x128xf32, #tpu.memory_space<vmem>>, %arg2: memref<128x128xbf16, #tpu.memory_space<vmem>>, %arg3: memref<1x128xf32, #tpu.memory_space<vmem>>, %arg4: memref<128x128xbf16, #tpu.memory_space<vmem>>, %arg5: memref<1x128xf32, #tpu.memory_space<vmem>>, %arg6: memref<8x128xf32, #tpu.memory_space<vmem>>) attributes {dimension_semantics = [#tpu.dimension_semantics<parallel>], iteration_bounds = array<i64: 2>, scalar_prefetch = 0 : i64, scratch_operands = 0 : i64, tpu.core_type = #tpu.core_type<tc>, window_params = [{transform_indices = @transform_0, window_bounds = array<i64: 8, 128>}, {pipeline_mode = #tpu.pipeline_mode<synchronous>, transform_indices = @transform_1, window_bounds = array<i64: 128, 128>}, {pipeline_mode = #tpu.pipeline_mode<synchronous>, transform_indices = @transform_2, window_bounds = array<i64: 1, 128>}, {pipeline_mode = #tpu.pipeline_mode<synchronous>, transform_indices = @transform_3, window_bounds = array<i64: 128, 128>}, {pipeline_mode = #tpu.pipeline_mode<synchronous>, transform_indices = @transform_4, window_bounds = array<i64: 1, 128>}, {transform_indices = @transform_5, window_bounds = array<i64: 8, 128>}]} {
    %c0 = arith.constant 0 : index
    %c0_0 = arith.constant 0 : index
    %0 = vector.load %arg1[%c0, %c0_0] : memref<8x128xf32, #tpu.memory_space<vmem>>, vector<8x128xf32>
    %1 = arith.truncf %0 : vector<8x128xf32> to vector<8x128xbf16>
    %c0_1 = arith.constant 0 : index
    %c0_2 = arith.constant 0 : index
    %2 = vector.load %arg2[%c0_1, %c0_2] : memref<128x128xbf16, #tpu.memory_space<vmem>>, vector<128x128xbf16>
    %cst = arith.constant dense<0.000000e+00> : vector<8x128xf32>
    %3 = tpu.matmul %1, %2, %cst {dimension_numbers = #tpu.dot_dimension_numbers<[1], [0], [0], [1], [0, 0, 1, 1], [], []>} : vector<8x128xbf16>, vector<128x128xbf16>, vector<8x128xf32> -> vector<8x128xf32>
    %c0_3 = arith.constant 0 : index
    %c0_4 = arith.constant 0 : index
    %4 = vector.load %arg3[%c0_3, %c0_4] : memref<1x128xf32, #tpu.memory_space<vmem>>, vector<1x128xf32>
    %5 = vector.broadcast %4 : vector<1x128xf32> to vector<8x128xf32>
    %6 = arith.addf %3, %5 : vector<8x128xf32>
    %cst_5 = arith.constant 0.000000e+00 : f32
    %7 = vector.broadcast %cst_5 : f32 to vector<8x128xf32>
    %8 = arith.maximumf %6, %7 : vector<8x128xf32>
    %9 = arith.truncf %8 : vector<8x128xf32> to vector<8x128xbf16>
    %c0_6 = arith.constant 0 : index
    %c0_7 = arith.constant 0 : index
    %10 = vector.load %arg4[%c0_6, %c0_7] : memref<128x128xbf16, #tpu.memory_space<vmem>>, vector<128x128xbf16>
    %cst_8 = arith.constant dense<0.000000e+00> : vector<8x128xf32>
    %11 = tpu.matmul %9, %10, %cst_8 {dimension_numbers = #tpu.dot_dimension_numbers<[1], [0], [0], [1], [0, 0, 1, 1], [], []>} : vector<8x128xbf16>, vector<128x128xbf16>, vector<8x128xf32> -> vector<8x128xf32>
    %c0_9 = arith.constant 0 : index
    %c0_10 = arith.constant 0 : index
    %12 = vector.load %arg5[%c0_9, %c0_10] : memref<1x128xf32, #tpu.memory_space<vmem>>, vector<1x128xf32>
    %13 = vector.broadcast %12 : vector<1x128xf32> to vector<8x128xf32>
    %14 = arith.addf %11, %13 : vector<8x128xf32>
    %c0_11 = arith.constant 0 : index
    %c0_12 = arith.constant 0 : index
    %15 = vector.load %arg6[%c0_11, %c0_12] : memref<8x128xf32, #tpu.memory_space<vmem>>, vector<8x128xf32>
    tpu.vector_store %arg6[%c0_11, %c0_12], %14 {strides = array<i32>} : memref<8x128xf32, #tpu.memory_space<vmem>>, vector<8x128xf32>,
    return
  }
  func.func @transform_0(%arg0: i32) -> (i32, i32) {
    %c0_i32 = arith.constant 0 : i32
    %c0_i32_0 = arith.constant 0 : i32
    return %arg0, %c0_i32 : i32, i32
  }
  func.func @transform_1(%arg0: i32) -> (i32, i32) {
    %c0_i32 = arith.constant 0 : i32
    %c0_i32_0 = arith.constant 0 : i32
    %c0_i32_1 = arith.constant 0 : i32
    return %c0_i32, %c0_i32_0 : i32, i32
  }
  func.func @transform_2(%arg0: i32) -> (i32, i32) {
    %c0_i32 = arith.constant 0 : i32
    %c0_i32_0 = arith.constant 0 : i32
    %c0_i32_1 = arith.constant 0 : i32
    return %c0_i32, %c0_i32_0 : i32, i32
  }
  func.func @transform_3(%arg0: i32) -> (i32, i32) {
    %c0_i32 = arith.constant 0 : i32
    %c0_i32_0 = arith.constant 0 : i32
    %c0_i32_1 = arith.constant 0 : i32
    return %c0_i32, %c0_i32_0 : i32, i32
  }
  func.func @transform_4(%arg0: i32) -> (i32, i32) {
    %c0_i32 = arith.constant 0 : i32
    %c0_i32_0 = arith.constant 0 : i32
    %c0_i32_1 = arith.constant 0 : i32
    return %c0_i32, %c0_i32_0 : i32, i32
  }
  func.func @transform_5(%arg0: i32) -> (i32, i32) {
    %c0_i32 = arith.constant 0 : i32
    %c0_i32_0 = arith.constant 0 : i32
    return %arg0, %c0_i32 : i32, i32
  }
}

</mosaic_0001>

<bundles_post_ra>
// kernel: tpu_custom_call.1
= control target key start
LH: loop header
LB: loop body
LE: loop exit
PB: predicated region body
PF: predicated region fallthrough
CT: control target
= control target key end

     0   :  { %10 = vsyncpa [#allocation3], 0  ;;  %s1157_s0 = inlined_call_operand.hbm [shape: f32[16,128], index: 0, kind: input, shape index: {}]   ;;  %s1158_s1 = inlined_call_operand.hbm [shape: bf16[128,128], index: 1, kind: input, shape index: {}]   ;;  %s1159_s2 = inlined_call_operand.vmem [shape: f32[1,128], index: 2, kind: input, shape index: {}]   ;;  %s1160_s3 = inlined_call_operand.hbm [shape: bf16[128,128], index: 3, kind: input, shape index: {}]   ;;  %s1161_s4 = inlined_call_operand.vmem [shape: f32[1,128], index: 4, kind: input, shape index: {}]   ;;  %s1162_s5 = inlined_call_operand.hbm [shape: f32[16,128], index: 5, kind: output, shape index: {}]  }
   0x1   :  { %12 = vsyncpa [#allocation3 + $0x1], 0 }
   0x2   :  { %13 = vsyncpa [#allocation6], 0 }
   0x3   :  { %14 = vsyncpa [#allocation4], 0 }
   0x4   :  { %16 = vsyncpa [#allocation4 + $0x1], 0  ;;  %s967_s18 = smov 0   ;;  %s969_s19 = smov 0  }
   0x5   :  { %s971_s20 = smov 0   ;;  %s973_s21 = smov 0  }
   0x6 LB: > { %s988_s22 = sadd.s32 4294967295, %s927_s21   ;;  %s600_s23 = sadd.s32 4294967294, %s927_s21   ;;  %s927_s21 = sphi %s973_s21, %s1184_s21   ;;  %s923_s20 = sphi %s971_s20, %s1183_s20   ;;  %s919_s19 = sphi %s969_s19, %s1182_s19   ;;  %s915_s18 = sphi %s967_s18, %s1181_s18  }
   0x7   : > { %p42_p0 = scmp.ne.s32.totalorder %s919_s19, %s915_s18  ;;  %p1163_p1 = scmp.eq.s32.totalorder %s988_s22, 0 }
   0x8   : > { %p156_p3 = scmp.eq.s32.totalorder %s600_s23, 1  ;;  %p601_p5 = scmp.ge.s32.totalorder %s927_s21, 1 }
   0x9   : > { %p997_p4 = por %p1163_p1, %p42_p0  ;;  %p163_p7 = scmp.lt.s32.totalorder %s927_s21, 3 }
   0xa   : > { %p1002_p6 = por %p156_p3, %p42_p0  ;;  %s929_s27 = smov [#allocation5]  }
   0xb   : > { %s1167_s24 = scalar_select %p997_p4, 1, 0 }
   0xc   : > { %s1168_s25 = scalar_select %p1002_p6, 1, 0 }
   0xd   : > { %p1007_p8 = pnand %p601_p5, %p163_p7  ;;  %s175_s28 = sshll.u32 %s929_s27, 4  ;;  %s176_s28 = int_to_ptr.vmem [resolvable:$true] %s175_s28 }
   0xe   : > { %s930_s30 = smov [#allocation7]   ;;  %s790_s7 = scalar_lea.vmem %s176_s28, 1024 }
   0xf   : > { %s1169_s26 = scalar_select %p1007_p8, 1, 0 }
  0x10   : > { %p704_p9 = pneg %p1007_p8  ;;  %s191_s6 = sshll.u32 %s930_s30, 4  ;;  %s192_s6 = int_to_ptr.vmem [resolvable:$true] %s191_s6 }
  0x11   : > { %p791_p13 = scmp.ne.s32.totalorder %s176_s28, %s790_s7  ;;  %p798_p5 = scmp.lt.s32.totalorder %s176_s28, %s176_s28 }
  0x12   : > { %p1016_p11 = pnand %p704_p9, %p1163_p1  ;;  %p799_p7 = scmp.lt.s32.totalorder %s790_s7, %s790_s7 }
  0x14   : > { %p781_p12 = pneg %p1016_p11  ;;  %p800_p10 = por %p799_p7, %p798_p5 }
  0x16   : > { %p793_p0 = pnand %p791_p13, %p781_p12 }
  0x18   : > { %p794_p3 = pneg %p793_p0 }
  0x1a   : > { %p801_p9 = pnand %p800_p10, %p794_p3 }
  0x1c   : > { %804 = shalt.err (!%p801_p9)
}
  0x1d   : > { %s931_s8 = smov 64   ;;  %s932_s9 = smov 4  }
  0x1e   : > { %707 = dma.hbm_to_vmem [thread:$0]  (!%p1016_p11), %s1158_s1, 1024, %s176_s28, [#allocation6], %s931_s8, %s931_s8, %s932_s9  }
  0x1f   : > { %s816_s12 = scalar_lea.vmem %s192_s6, 1024  ;;  %p824_p2 = scmp.lt.s32.totalorder %s192_s6, %s192_s6 }
  0x20   : > { %p817_p1 = scmp.ne.s32.totalorder %s192_s6, %s816_s12  ;;  %p825_p6 = scmp.lt.s32.totalorder %s816_s12, %s816_s12 }
  0x22   : > { %p819_p13 = pnand %p817_p1, %p781_p12  ;;  %p826_p5 = por %p825_p6, %p824_p2 }
  0x24   : > { %p820_p0 = pneg %p819_p13 }
  0x26   : > { %p827_p10 = pnand %p826_p5, %p820_p0 }
  0x28   : > { %830 = shalt.err (!%p827_p10)
}
  0x29   : > { %710 = dma.hbm_to_vmem [thread:$0]  (!%p1016_p11), %s1160_s3, 1024, %s192_s6, [#allocation6], %s931_s8, %s931_s8, %s932_s9  }
  0x2a   : > { %s1039_s15 = sadd.s32 1, %s927_s21   ;;  %s29_s16 = sadd.s32 1, %s923_s20 }
  0x2b   : > { %s26_s17 = ssub.s32 %s927_s21, %s1039_s15  ;;  %p36_p1 = scmp.ne.s32.totalorder %s923_s20, %s919_s19 }
  0x2c   : > { %p27_p2 = scmp.eq.s32.totalorder %s26_s17, 0  ;;  %p37_p6 = scmp.eq.s32.totalorder %s927_s21, 0 }
  0x2d   : > { %p1171_p12 = scmp.eq.s32.totalorder %s988_s22, 1  ;;  %p721_p7 = scmp.lt.s32.totalorder %s927_s21, 2 }
  0x2e   : > { %s1055_s27 = scalar_select %p27_p2, %s923_s20, %s29_s16  }
  0x2f   : > { %p1049_p3 = por %p1171_p12, %p36_p1  ;;  %p38_p9 = por %p37_p6, %p36_p1 }
  0x30   : > { %s208_s28 = sand.u32 1, %s923_s20   ;;  %s606_s30 = sshll.u32 %s927_s21, 7 }
  0x31   : > { %s1172_s23 = scalar_select %p1049_p3, 1, 0 }
  0x32   : > { %s605_s29 = sshll.u32 %s208_s28, 3  ;;  %s1062_s8 = scalar_lea.hbm %s1157_s0, %s606_s30 }
  0x33   : > { %s212_s9 = scalar_lea.vmem [#allocation2], %s605_s29  ;;  %p1064_p11 = pnand %p721_p7, %p38_p9 }
  0x34   : > { %s219_s10 = sshll.u32 %s212_s9, 4  ;;  %s209_s12 = scalar_lea.sflag [#allocation3], %s208_s28  ;;  %s220_s10 = int_to_ptr.vmem [resolvable:$true] %s219_s10 }
  0x35   : > { %s831_s13 = scalar_lea.hbm %s1062_s8, 128  ;;  %p833_p0 = pneg %p1064_p11 }
  0x36   : > { %p832_p13 = scmp.ne.s32.totalorder %s1062_s8, %s831_s13  ;;  %s836_s17 = scalar_lea.hbm %s1157_s0, 256 }
  0x37   : > { %p837_p1 = scmp.lt.s32.totalorder %s1062_s8, %s1157_s0  ;;  %p838_p2 = scmp.lt.s32.totalorder %s836_s17, %s831_s13 }
  0x38   : > { %p834_p5 = pnand %p833_p0, %p832_p13 }
  0x39   : > { %p839_p6 = por %p838_p2, %p837_p1 }
  0x3a   : > { %p835_p10 = pneg %p834_p5 }
  0x3c   : > { %p840_p12 = pnand %p839_p6, %p835_p10 }
  0x3e   : > { %843 = shalt.err (!%p840_p12)
}
  0x3f   : > { %s844_s6 = scalar_lea.vmem %s220_s10, 128  ;;  %s933_s28 = smov [#allocation2]  }
  0x40   : > { %p845_p7 = scmp.ne.s32.totalorder %s220_s10, %s844_s6  ;;  %s849_s7 = sshll.u32 %s933_s28, 4  ;;  %s850_s7 = int_to_ptr.vmem [resolvable:$false] %s849_s7 }
  0x41   : > { %s851_s9 = scalar_lea.vmem %s850_s7, 256  ;;  %p852_p13 = scmp.lt.s32.totalorder %s220_s10, %s850_s7 }
  0x42   : > { %p847_p9 = pnand %p845_p7, %p833_p0  ;;  %p853_p5 = scmp.lt.s32.totalorder %s851_s9, %s844_s6 }
  0x44   : > { %p848_p3 = pneg %p847_p9  ;;  %p854_p4 = por %p853_p5, %p852_p13 }
  0x46   : > { %p855_p8 = pnand %p854_p4, %p848_p3 }
  0x48   : > { %858 = shalt.err (!%p855_p8)
}
  0x49   : > { %714 = dma.hbm_to_vmem [thread:$0]  (!%p1064_p11), %s1062_s8, 128, %s220_s10, %s209_s12  }
  0x4a   : > { %p1174_p10 = scmp.ne.s32.totalorder %s1169_s26, 0 }
  0x4b   : > { %s1085_s13 = sand.u32 (!%p1174_p10), 1, %s919_s19   ;;  %p1175_p4 = scmp.ne.s32.totalorder (!%p1174_p10), %s1167_s24, 0 }
  0x4c   : > { %228 = sbr.rel (%p1174_p10) target bundleno = 527 (0x20f), region = 40  ;;  %s608_s14 = sshll.u32 (!%p1174_p10), %s1085_s13, 3 }
  0x4d   : > { %s231_s16 = scalar_lea.sflag (!%p1174_p10), [#allocation3], %s1085_s13  ;;  %s1091_s17 = scalar_lea.vmem (!%p1174_p10), [#allocation2], %s608_s14 }
  0x51   : > { %902 = dma.done.wait (%p1175_p4), %s231_s16, 128  }
  0x52   : > { %904 = vsyncadd (%p1175_p4), %s231_s16, 4294967168  ;;  %p1176_p8 = scmp.eq.s32.totalorder %s988_s22, 0 }
  0x54   : > { %906 = dma.done.wait (%p1176_p8), [#allocation6], 2048   ;;  %p1177_p3 = pmov %p1176_p8 }
  0x55   : > { %v934_v0 = vmov 0.0   ;;  %vm935_vm0 = vmmov 0   ;;  %v763_v1 = vld [vmem:[#allocation5 + $0x38] sm:$0xff]   ;;  %v764_v2 = vld [vmem:[#allocation5 + $0x30] sm:$0xff]   ;;  %v765_v3 = vld [vmem:[#allocation5 + $0x28] sm:$0xff]   ;;  %s631_s11 = sshll.u32 %s988_s22, 7 }
  0x56   : > { %908 = vsyncadd (%p1177_p3), [#allocation6], 4294965248  ;;  %652 = vmatprep.subr.bf16.mxu0 %v934_v0  ;;  %668 = vmatprep.mubr.msk.bf16.mxu0 %vm935_vm0, %v934_v0  ;;  %v771_v4 = vld [vmem:[#allocation7 + $0x38] sm:$0xff]   ;;  %v766_v5 = vld [vmem:[#allocation5 + $0x20] sm:$0xff]   ;;  %s268_s12 = scalar_lea.vmem [#allocation8], %s608_s14  ;;  %s1114_s28 = scalar_lea.hbm %s1162_s5, %s631_s11 }
  0x57   : > { %672 = vmatprep.subr.bf16.mxu1 %v934_v0  ;;  %688 = vmatprep.mubr.msk.bf16.mxu1 %vm935_vm0, %v934_v0  ;;  %v772_v6 = vld [vmem:[#allocation7 + $0x30] sm:$0xff]   ;;  %v767_v7 = vld [vmem:[#allocation5 + $0x18] sm:$0xff]   ;;  %v773_v8 = vld [vmem:[#allocation7 + $0x28] sm:$0xff]   ;;  %s511_s30 = sshll.u32 %s268_s12, 4  ;;  %s498_s7 = scalar_lea.sflag [#allocation4], %s1085_s13  ;;  %s1116_s30 = int_to_ptr.vmem [resolvable:$true] %s511_s30 }
  0x58   : > { %653 = vmatpush3.bf16.msra.mxu0 %v763_v1  ;;  %673 = vmatpush3.bf16.msra.mxu1 %v771_v4  ;;  %v768_v9 = vld [vmem:[#allocation5 + $0x10] sm:$0xff]   ;;  %v774_v10 = vld [vmem:[#allocation7 + $0x20] sm:$0xff]   ;;  %v769_v11 = vld [vmem:[#allocation5 + $0x8] sm:$0xff]   ;;  %s859_s22 = scalar_lea.vmem %s1116_s30, 128  ;;  %p1178_p0 = scmp.ne.s32.totalorder %s1172_s23, 0 }
  0x59   : > { %654 = vmatprep.subr.bf16.mxu0 %v934_v0  ;;  %674 = vmatprep.subr.bf16.mxu1 %v934_v0  ;;  %v775_v12 = vld [vmem:[#allocation7 + $0x18] sm:$0xff]   ;;  %v770_v13 = vld [vmem:[#allocation5] sm:$0xff]   ;;  %v776_v15 = vld [vmem:[#allocation7 + $0x10] sm:$0xff]   ;;  %p860_p11 = scmp.ne.s32.totalorder %s1116_s30, %s859_s22  ;;  %s936_s9 = smov [#allocation8]  }
  0x5a   : > { %v270_v14 = vld [vmem:[%s1091_s17] sm:$0xff]  ;;  %v777_v17 = vld [vmem:[#allocation7 + $0x8] sm:$0xff]   ;;  %v778_v18 = vld [vmem:[#allocation7] sm:$0xff]   ;;  %s863_s14 = sshll.u32 %s936_s9, 4  ;;  %s864_s14 = int_to_ptr.vmem [resolvable:$false] %s863_s14 }
  0x5b   : > { %v271_v16 = vpack.c.bf16 %v270_v14, %v270_v14  ;;  %v612_v19 = vld [vmem:[%s1159_s2] ss:$0 sm:$0xff]  ;;  %p861_p1 = pnand %p860_p11, %p1178_p0  ;;  %s865_s16 = scalar_lea.vmem %s864_s14, 256 }
  0x5c   : > { %655 = vmatpush3.bf16.msra.mxu0 %v764_v2  ;;  %675 = vmatpush3.bf16.msra.mxu1 %v772_v6  ;;  %v621_v27 = vld [vmem:[%s1161_s4] ss:$0 sm:$0xff]  ;;  %p866_p6 = scmp.lt.s32.totalorder %s1116_s30, %s864_s14  ;;  %p867_p12 = scmp.lt.s32.totalorder %s865_s16, %s859_s22 }
  0x5d   : > { %656 = vmatprep.subr.bf16.mxu0 %v934_v0  ;;  %676 = vmatprep.subr.bf16.mxu1 %v934_v0  ;;  %p862_p2 = pneg %p861_p1 }
  0x5e   : > { %p868_p7 = por %p867_p12, %p866_p6 }
  0x60   : > { %657 = vmatpush3.bf16.msra.mxu0 %v765_v3  ;;  %677 = vmatpush3.bf16.msra.mxu1 %v773_v8  ;;  %p869_p9 = pnand %p868_p7, %p862_p2 }
  0x61   : > { %658 = vmatprep.subr.bf16.mxu0 %v934_v0  ;;  %678 = vmatprep.subr.bf16.mxu1 %v934_v0 }
  0x64   : > { %659 = vmatpush3.bf16.msra.mxu0 %v766_v5  ;;  %679 = vmatpush3.bf16.msra.mxu1 %v774_v10 }
  0x65   : > { %660 = vmatprep.subr.bf16.mxu0 %v934_v0  ;;  %680 = vmatprep.subr.bf16.mxu1 %v934_v0 }
  0x68   : > { %661 = vmatpush3.bf16.msra.mxu0 %v767_v7  ;;  %681 = vmatpush3.bf16.msra.mxu1 %v775_v12 }
  0x69   : > { %662 = vmatprep.subr.bf16.mxu0 %v934_v0  ;;  %682 = vmatprep.subr.bf16.mxu1 %v934_v0 }
  0x6c   : > { %663 = vmatpush3.bf16.msra.mxu0 %v768_v9  ;;  %683 = vmatpush3.bf16.msra.mxu1 %v776_v15 }
  0x6d   : > { %664 = vmatprep.subr.bf16.mxu0 %v934_v0  ;;  %684 = vmatprep.subr.bf16.mxu1 %v934_v0 }
  0x70   : > { %665 = vmatpush3.bf16.msra.mxu0 %v769_v11  ;;  %685 = vmatpush3.bf16.msra.mxu1 %v777_v17 }
  0x71   : > { %666 = vmatprep.subr.bf16.mxu0 %v934_v0  ;;  %686 = vmatprep.subr.bf16.mxu1 %v934_v0 }
  0x74   : > { %667 = vmatpush3.bf16.msra.mxu0 %v770_v13  ;;  %687 = vmatpush3.bf16.msra.mxu1 %v778_v18 }
  0x77   : > { %669 = vmatmul.mubr.bf16.vlgmr.msra.gmra.mxu0 %v271_v16 }
 0x137   : > { %v377_v20 = vpop.f32.mrf.mxu0 }
 0x138   : > { %v378_v21 = vadd.f32 %v612_v19, %v377_v20 }
 0x139   : > { %v670_v22 = vpop.f32.mrf.mxu0 }
 0x13a   : > { %v383_v23 = vmax.f32 %v378_v21, 0.0 }
 0x13b   : > { %v380_v24 = vpop.f32.mrf.mxu0 }
 0x13c   : > { %v384_v25 = vpack.c.bf16 %v383_v23, %v383_v23 }
 0x13d   : > { %v671_v26 = vpop.f32.mrf.mxu0 }
 0x13e   : > { %689 = vmatmul.mubr.bf16.vlgmr.msra.gmra.mxu1 %v384_v25 }
 0x1fe   : > { %v490_v28 = vpop.f32.mrf.mxu1 }
 0x1ff   : > { %v491_v29 = vadd.f32 %v621_v27, %v490_v28 }
 0x200   : > { %v690_v30 = vpop.f32.mrf.mxu1 }
 0x201   : > { %496 = vst [vmem:[%s268_s12] sm:$0xff] %v491_v29 }
 0x202   : > { %v493_v31 = vpop.f32.mrf.mxu1 }
 0x203   : > { %872 = shalt.err (!%p869_p9)
}
 0x204   : > { %s873_s17 = scalar_lea.hbm %s1114_s28, 128  ;;  %s877_s26 = scalar_lea.hbm %s1162_s5, 256 }
 0x205   : > { %p874_p13 = scmp.ne.s32.totalorder %s1114_s28, %s873_s17  ;;  %p878_p4 = scmp.lt.s32.totalorder %s1114_s28, %s1162_s5 }
 0x206   : > { %p879_p8 = scmp.lt.s32.totalorder %s877_s26, %s873_s17 }
 0x207   : > { %p875_p5 = pnand %p874_p13, %p1178_p0 }
 0x208   : > { %p880_p3 = por %p879_p8, %p878_p4 }
 0x209   : > { %p876_p10 = pneg %p875_p5 }
 0x20b   : > { %p881_p11 = pnand %p880_p3, %p876_p10 }
 0x20d   : > { %884 = shalt.err (!%p881_p11)
}
 0x20e   : > { %702 = dma.vmem_to_hbm [thread:$0]  (%p1178_p0), %s1116_s30, 128, %s1114_s28, %s498_s7   ;;  %v691_v32 = vpop.f32.mrf.mxu1 }
 0x20f PF: > { %s523_s11 = sand.u32 1, %s915_s18   ;;  %p1179_p1 = scmp.ne.s32.totalorder %s1168_s25, 0 }
 0x210   : > { %p1180_p2 = scmp.ge.s32.totalorder %s927_s21, 2  ;;  %s524_s12 = scalar_lea.sflag [#allocation4], %s523_s11 }
 0x212   : > { %p716_p6 = pnand %p1180_p2, %p1179_p1 }
 0x214   : > { %p717_p12 = pneg %p716_p6 }
 0x216   : > { %910 = dma.done.wait (%p717_p12), %s524_s12, 128  }
 0x217   : > { %912 = vsyncadd (%p717_p12), %s524_s12, 4294967168  ;;  %p19_p7 = scmp.ge.s32.totalorder %s1039_s15, 4   ;;  %s1181_s18 = smov %s919_s19 }
 0x218   : > { %s1182_s19 = smov %s923_s20  ;;  %s1183_s20 = smov %s1055_s27 }
 0x219   : > { %s1184_s21 = smov %s1039_s15  ;;  %21 = sbr.rel (!%p19_p7) target bundleno = 6 (0x6), region = 93 }
 0x21e   :  { %529 = vsyncpa [#allocation3], 1 }
 0x21f   :  { %531 = vsyncpa [#allocation3 + $0x1], 1 }
 0x220   :  { %532 = vsyncpa [#allocation6], 1 }
 0x221   :  { %533 = vsyncpa [#allocation4], 1 }
 0x222   :  { %535 = vsyncpa [#allocation4 + $0x1], 1 }

</bundles_post_ra>
